<compile_context>
chip_gen: v7x
topology: tpu7x:2x2x1
jax: 0.10.0
libtpu: 0.0.40
codegen_flags: <defaults>
</compile_context>

<pallas_src>
import jax
import jax.numpy as jnp
from jax import lax
from jax.experimental import pallas as pl
from jax.experimental.pallas import tpu as pltpu


# ------------------------------ helpers -------------------------------------

def _round_up(x, m):
    return ((x + m - 1) // m) * m


def _pad2(a, rows, cols):
    return jnp.pad(a, ((0, rows - a.shape[0]), (0, cols - a.shape[1])))


def _pad_mlp(params, in_pad, hid_pad, out_pad):
    """Zero-pad MLP params; matmul weights cast to bf16, biases stay f32."""
    w1, b1, w2, b2 = params
    return (_pad2(w1, in_pad, hid_pad).astype(jnp.bfloat16),
            _pad2(b1, 1, hid_pad).astype(jnp.float32),
            _pad2(w2, hid_pad, out_pad).astype(jnp.bfloat16),
            _pad2(b2, 1, out_pad).astype(jnp.float32))


def _pick_npad(n):
    """Node-axis padding: power-of-two multiple of 128 up to 2048, then x2048."""
    n128 = _round_up(n, 128)
    if n128 <= 2048:
        p = 128
        while p < n128:
            p *= 2
        return p
    return _round_up(n, 2048)


# ----------------------------- Pallas kernels -------------------------------

def _target_encoder_kernel(x_ref, w1_ref, b1_ref, w2_ref, b2_ref, y_ref, ynT_ref):
    """target_y = MLP(x); also emit the row-L2-normalized teacher TRANSPOSED
    ([d_pad, tm] bf16) so kernel 2's sim matmul needs no in-loop transpose."""
    h = jnp.dot(x_ref[...], w1_ref[...],
                preferred_element_type=jnp.float32) + b1_ref[...]
    h = jnp.maximum(h, 0.0)
    y = jnp.dot(h.astype(jnp.bfloat16), w2_ref[...],
                preferred_element_type=jnp.float32) + b2_ref[...]
    y_ref[...] = y
    # F.normalize(dim=-1, eps=1e-12): 1/max(||y||, eps) == rsqrt(max(||y||^2, eps^2))
    inv = lax.rsqrt(jnp.maximum(jnp.sum(y * y, axis=-1, keepdims=True), 1e-24))
    ynT_ref[...] = jnp.transpose(y * inv).astype(jnp.bfloat16)


# ------------------------------ wrappers -------------------------------------

def target_encoder_forward(x_p, w1, b1, w2, b2, *, tm):
    n_pad, f_pad = x_p.shape
    h_pad = w1.shape[1]
    d_pad = w2.shape[1]
    return pl.pallas_call(
        _target_encoder_kernel,
        out_shape=(jax.ShapeDtypeStruct((n_pad, d_pad), jnp.float32),
                   jax.ShapeDtypeStruct((d_pad, n_pad), jnp.bfloat16)),
        grid_spec=pltpu.PrefetchScalarGridSpec(
            num_scalar_prefetch=0,
            grid=(n_pad // tm,),
            in_specs=[
                pl.BlockSpec((tm, f_pad), lambda i: (i, 0)),
                pl.BlockSpec((f_pad, h_pad), lambda i: (0, 0)),
                pl.BlockSpec((1, h_pad), lambda i: (0, 0)),
                pl.BlockSpec((h_pad, d_pad), lambda i: (0, 0)),
                pl.BlockSpec((1, d_pad), lambda i: (0, 0)),
            ],
            out_specs=[
                pl.BlockSpec((tm, d_pad), lambda i: (i, 0)),
                pl.BlockSpec((d_pad, tm), lambda i: (0, i)),
            ],
        ),
        compiler_params=pltpu.CompilerParams(
            dimension_semantics=("parallel",),
            vmem_limit_bytes=48 * 1024 * 1024),
    )(x_p, w1, b1, w2, b2)


def online_fused_topk_forward(x_p, enc_params, target_ynT, *, tm, tk, k, n_valid):
    """Fused: online encoder MLP + L2 normalize + sim tile + streaming top-k.

    Grid = (query_tile i [parallel], teacher_tile j [arbitrary]).  The MLP and
    normalization run once per query tile (j == 0); the normalized student tile
    and the running [tm, k] top-k values stay resident in VMEM scratch across
    all teacher tiles.  Only [n_pad, k] int32 neighbor indices leave the kernel
    (plus online_y) — the N x N similarity never touches HBM.
    """
    n_pad, f_pad = x_p.shape
    w1, b1, w2, b2 = enc_params
    h_pad = w1.shape[1]
    d_pad = w2.shape[1]
    width = k + tk

    def kernel(x_ref, w1_ref, b1_ref, w2_ref, b2_ref, tynT_ref,
               y_ref, topi_ref, yn_scr, topv_scr):
        j = pl.program_id(1)

        @pl.when(j == 0)
        def _():
            h = jnp.dot(x_ref[...], w1_ref[...],
                        preferred_element_type=jnp.float32) + b1_ref[...]
            h = jnp.maximum(h, 0.0)
            y = jnp.dot(h.astype(jnp.bfloat16), w2_ref[...],
                        preferred_element_type=jnp.float32) + b2_ref[...]
            y_ref[...] = y
            inv = lax.rsqrt(jnp.maximum(jnp.sum(y * y, axis=-1, keepdims=True),
                                        1e-24))
            yn_scr[...] = (y * inv).astype(jnp.bfloat16)
            topv_scr[...] = jnp.full((tm, k), -jnp.inf, jnp.float32)
            topi_ref[...] = jnp.zeros((tm, k), jnp.int32)

        # sim tile: plain [tm, d] @ [d, tk]; teacher was pre-transposed in kernel 1.
        s = jnp.dot(yn_scr[...], tynT_ref[...], preferred_element_type=jnp.float32)
        col = j * tk + lax.broadcasted_iota(jnp.int32, (tm, tk), 1)
        s = jnp.where(col < n_valid, s, -jnp.inf)   # mask padded teacher columns

        # Streaming top-k merge: carried [tm, k] top-k  U  current [tm, tk] tile.
        cand_v = jnp.concatenate([topv_scr[...], s], axis=1)
        cand_i = jnp.concatenate([topi_ref[...], col], axis=1)
        pos = lax.broadcasted_iota(jnp.int32, (tm, width), 1)
        vcols, icols = [], []
        for _ in range(k):                          # sorted descending, like torch.topk
            m = jnp.max(cand_v, axis=1, keepdims=True)
            hit = cand_v == m
            first = jnp.min(jnp.where(hit, pos, width), axis=1, keepdims=True)
            sel = pos == first
            icols.append(jnp.sum(jnp.where(sel, cand_i, 0), axis=1, keepdims=True))
            vcols.append(m)
            cand_v = jnp.where(sel, -jnp.inf, cand_v)
        topv_scr[...] = jnp.concatenate(vcols, axis=1)
        topi_ref[...] = jnp.concatenate(icols, axis=1)

    return pl.pallas_call(
        kernel,
        out_shape=(jax.ShapeDtypeStruct((n_pad, d_pad), jnp.float32),  # online_y
                   jax.ShapeDtypeStruct((n_pad, k), jnp.int32)),       # knn cols
        grid_spec=pltpu.PrefetchScalarGridSpec(
            num_scalar_prefetch=0,
            grid=(n_pad // tm, n_pad // tk),
            in_specs=[
                pl.BlockSpec((tm, f_pad), lambda i, j: (i, 0)),
                pl.BlockSpec((f_pad, h_pad), lambda i, j: (0, 0)),
                pl.BlockSpec((1, h_pad), lambda i, j: (0, 0)),
                pl.BlockSpec((h_pad, d_pad), lambda i, j: (0, 0)),
                pl.BlockSpec((1, d_pad), lambda i, j: (0, 0)),
                pl.BlockSpec((d_pad, tk), lambda i, j: (0, j)),
            ],
            out_specs=[
                pl.BlockSpec((tm, d_pad), lambda i, j: (i, 0)),
                pl.BlockSpec((tm, k), lambda i, j: (i, 0)),
            ],
            scratch_shapes=[pltpu.VMEM((tm, d_pad), jnp.bfloat16),
                            pltpu.VMEM((tm, k), jnp.float32)],
        ),
        compiler_params=pltpu.CompilerParams(
            dimension_semantics=("parallel", "arbitrary"),
            vmem_limit_bytes=48 * 1024 * 1024),
    )(x_p, w1, b1, w2, b2, target_ynT)


class BGRL:
    """JAX/Pallas port of the MPGCL BGRL module (forward pass only)."""

    def __init__(self, online_params, predictor_params, target_params, tau=0.5):
        self.tau = tau
        self.online_params = online_params
        # Predictor params are kept for module parity, but online_q is never
        # consumed by forward()'s returns, so its compute is skipped (dead work).
        self.predictor_params = predictor_params
        self.target_params = target_params  # frozen (requires_grad=False analogue)

    def forward(self, online_x, target_x, k):
        n, f = online_x.shape
        h_enc = self.online_params[0].shape[1]
        d = self.online_params[2].shape[1]

        # Lane-align feature dims; tile node axis with 128-multiple tiles.
        f_pad = _round_up(f, 128)
        h_pad = _round_up(h_enc, 128)
        d_pad = _round_up(d, 128)

        n_pad = _pick_npad(n)
        tk = min(n_pad, 2048)     # wide, lane-dense teacher tile (amortizes grid overhead)
        tm = min(n_pad, 256)      # query rows/step; >=2 i-tiles once n_pad>=512 (megacore)
        tm_t = min(n_pad, 512)    # kernel-1 row tile, independent & larger

        enc_o = _pad_mlp(self.online_params, f_pad, h_pad, d_pad)
        enc_t = _pad_mlp(self.target_params, f_pad, h_pad, d_pad)

        ox = _pad2(online_x, n_pad, f_pad).astype(jnp.bfloat16)
        tx = _pad2(target_x, n_pad, f_pad).astype(jnp.bfloat16)

        # Kernel 1: target encoder (detached); emits normalized teacher transposed.
        target_y_p, target_ynT_p = target_encoder_forward(tx, *enc_t, tm=tm_t)
        target_y_p = lax.stop_gradient(target_y_p)
        target_ynT_p = lax.stop_gradient(target_ynT_p)

        # Kernel 2: fused online encoder + normalize + similarity + streaming top-k.
        online_y_p, topi_p = online_fused_topk_forward(
            ox, enc_o, target_ynT_p, tm=tm, tk=tk, k=k, n_valid=n)

        online_y = online_y_p[:n, :d]
        target_y = target_y_p[:n, :d]

        # posgraph(): create_sparse()._indices() equivalent (row/col COO indices).
        # TODO(synk): torch.sparse_coo_tensor itself has no Pallas equivalent; we
        # return its _indices() directly (matching the torch forward's return).
        rows = jnp.repeat(jnp.arange(n, dtype=jnp.int32), k)
        cols = topi_p[:n].reshape(-1).astype(jnp.int32)
        knn = jnp.stack([rows, cols], axis=0)              # [2, N*k]
        return online_y, target_y, knn


# ------------------------------- main ----------------------------------------

def _init_mlp(key, fan_in, hidden, fan_out):
    k1, k2, k3, k4 = jax.random.split(key, 4)
    s1 = 1.0 / jnp.sqrt(fan_in)
    s2 = 1.0 / jnp.sqrt(hidden)
    w1 = jax.random.uniform(k1, (fan_in, hidden), jnp.float32, -s1, s1)
    b1 = jax.random.uniform(k2, (1, hidden), jnp.float32, -s1, s1)
    w2 = jax.random.uniform(k3, (hidden, fan_out), jnp.float32, -s2, s2)
    b2 = jax.random.uniform(k4, (1, fan_out), jnp.float32, -s2, s2)
    return (w1, b1, w2, b2)


def _ref_mlp(x, p):
    w1, b1, w2, b2 = p
    return jnp.maximum(x @ w1 + b1, 0.0) @ w2 + b2


if __name__ == "__main__":
    # Small shapes: N=64 nodes, F=32 input features, H=64 hidden, D=32 embed, k=4
    N, F, H, D, K = 64, 32, 64, 32, 4

    key = jax.random.PRNGKey(0)
    k_online, k_target, k_pred, k_x1, k_x2 = jax.random.split(key, 5)

    online_params = _init_mlp(k_online, F, H, D)
    target_params = _init_mlp(k_target, F, H, D)   # target_encoder.reset_parameters()
    predictor_params = _init_mlp(k_pred, D, H, D)

    model = BGRL(online_params, predictor_params, target_params, tau=0.5)

    online_feats = jax.random.normal(k_x1, (N, F), jnp.float32)
    target_feats = jax.random.normal(k_x2, (N, F), jnp.float32)

    online_y, target_y, knn = model.forward(online_feats, target_feats, K)
    jax.block_until_ready((online_y, target_y, knn))

    assert online_y.shape == (N, D)
    assert target_y.shape == (N, D)
    assert knn.shape == (2, N * K)
    assert bool(jnp.all((knn[1] >= 0) & (knn[1] < N)))

    # Loose numerical check vs. pure-JAX f32 reference (bf16 MXU operands inside).
    ref_online = _ref_mlp(online_feats, online_params)
    ref_target = _ref_mlp(target_feats, target_params)
    assert float(jnp.max(jnp.abs(online_y - ref_online))) < 0.1
    assert float(jnp.max(jnp.abs(target_y - ref_target))) < 0.1

    # Top-k sanity: similarity values of the kernel-selected neighbors (under an
    # f32 reference sim) should match the reference top-k values; ties may swap
    # indices and bf16 operands add small jitter, so a loose tolerance is used.
    def _norm(a):
        return a / jnp.maximum(jnp.linalg.norm(a, axis=-1, keepdims=True), 1e-12)
    ref_sim = _norm(ref_online) @ _norm(ref_target).T
    ref_topv, _ = lax.top_k(ref_sim, K)
    sel_v = jnp.take_along_axis(ref_sim, knn[1].reshape(N, K), axis=1)
    sel_v = -jnp.sort(-sel_v, axis=1)
    assert float(jnp.max(jnp.abs(sel_v - ref_topv))) < 0.1

    print("KERNEL_OK")
</pallas_src>

<mosaic_0001>
module attributes {stable_mosaic.version = 11 : i64} {
  func.func @_target_encoder_kernel(%arg0: i32, %arg1: memref<128x128xbf16, #tpu.memory_space<vmem>>, %arg2: memref<128x128xbf16, #tpu.memory_space<vmem>>, %arg3: memref<1x128xf32, #tpu.memory_space<vmem>>, %arg4: memref<128x128xbf16, #tpu.memory_space<vmem>>, %arg5: memref<1x128xf32, #tpu.memory_space<vmem>>, %arg6: memref<128x128xf32, #tpu.memory_space<vmem>>, %arg7: memref<128x128xbf16, #tpu.memory_space<vmem>>) attributes {dimension_semantics = [#tpu.dimension_semantics<parallel>], iteration_bounds = array<i64: 1>, scalar_prefetch = 0 : i64, scratch_operands = 0 : i64, tpu.core_type = #tpu.core_type<tc>, window_params = [{transform_indices = @transform_0, window_bounds = array<i64: 128, 128>}, {pipeline_mode = #tpu.pipeline_mode<synchronous>, transform_indices = @transform_1, window_bounds = array<i64: 128, 128>}, {pipeline_mode = #tpu.pipeline_mode<synchronous>, transform_indices = @transform_2, window_bounds = array<i64: 1, 128>}, {pipeline_mode = #tpu.pipeline_mode<synchronous>, transform_indices = @transform_3, window_bounds = array<i64: 128, 128>}, {pipeline_mode = #tpu.pipeline_mode<synchronous>, transform_indices = @transform_4, window_bounds = array<i64: 1, 128>}, {transform_indices = @transform_5, window_bounds = array<i64: 128, 128>}, {transform_indices = @transform_6, window_bounds = array<i64: 128, 128>}]} {
    %c0 = arith.constant 0 : index
    %c0_0 = arith.constant 0 : index
    %0 = vector.load %arg1[%c0, %c0_0] : memref<128x128xbf16, #tpu.memory_space<vmem>>, vector<128x128xbf16>
    %c0_1 = arith.constant 0 : index
    %c0_2 = arith.constant 0 : index
    %1 = vector.load %arg2[%c0_1, %c0_2] : memref<128x128xbf16, #tpu.memory_space<vmem>>, vector<128x128xbf16>
    %cst = arith.constant dense<0.000000e+00> : vector<128x128xf32>
    %2 = tpu.matmul %0, %1, %cst {dimension_numbers = #tpu.dot_dimension_numbers<[1], [0], [0], [1], [0, 0, 1, 1], [], []>} : vector<128x128xbf16>, vector<128x128xbf16>, vector<128x128xf32> -> vector<128x128xf32>
    %c0_3 = arith.constant 0 : index
    %c0_4 = arith.constant 0 : index
    %3 = vector.load %arg3[%c0_3, %c0_4] : memref<1x128xf32, #tpu.memory_space<vmem>>, vector<1x128xf32>
    %4 = vector.broadcast %3 : vector<1x128xf32> to vector<128x128xf32>
    %5 = arith.addf %2, %4 : vector<128x128xf32>
    %cst_5 = arith.constant 0.000000e+00 : f32
    %6 = vector.broadcast %cst_5 : f32 to vector<128x128xf32>
    %7 = arith.maximumf %5, %6 : vector<128x128xf32>
    %8 = arith.truncf %7 : vector<128x128xf32> to vector<128x128xbf16>
    %c0_6 = arith.constant 0 : index
    %c0_7 = arith.constant 0 : index
    %9 = vector.load %arg4[%c0_6, %c0_7] : memref<128x128xbf16, #tpu.memory_space<vmem>>, vector<128x128xbf16>
    %cst_8 = arith.constant dense<0.000000e+00> : vector<128x128xf32>
    %10 = tpu.matmul %8, %9, %cst_8 {dimension_numbers = #tpu.dot_dimension_numbers<[1], [0], [0], [1], [0, 0, 1, 1], [], []>} : vector<128x128xbf16>, vector<128x128xbf16>, vector<128x128xf32> -> vector<128x128xf32>
    %c0_9 = arith.constant 0 : index
    %c0_10 = arith.constant 0 : index
    %11 = vector.load %arg5[%c0_9, %c0_10] : memref<1x128xf32, #tpu.memory_space<vmem>>, vector<1x128xf32>
    %12 = vector.broadcast %11 : vector<1x128xf32> to vector<128x128xf32>
    %13 = arith.addf %10, %12 : vector<128x128xf32>
    %c0_11 = arith.constant 0 : index
    %c0_12 = arith.constant 0 : index
    %14 = vector.load %arg6[%c0_11, %c0_12] : memref<128x128xf32, #tpu.memory_space<vmem>>, vector<128x128xf32>
    tpu.vector_store %arg6[%c0_11, %c0_12], %13 {strides = array<i32>} : memref<128x128xf32, #tpu.memory_space<vmem>>, vector<128x128xf32>,
    %15 = arith.mulf %13, %13 : vector<128x128xf32>
    %cst_13 = arith.constant dense<0.000000e+00> : vector<128xf32>
    %16 = vector.multi_reduction <add>, %15, %cst_13 [1] : vector<128x128xf32> to vector<128xf32>
    %17 = vector.shape_cast %16 : vector<128xf32> to vector<128x1xf32>
    %cst_14 = arith.constant 1.000000e-24 : f32
    %18 = vector.broadcast %cst_14 : f32 to vector<128x1xf32>
    %19 = arith.maximumf %17, %18 : vector<128x1xf32>
    %20 = math.rsqrt %19 : vector<128x1xf32>
    %21 = vector.broadcast %20 : vector<128x1xf32> to vector<128x128xf32>
    %22 = arith.mulf %13, %21 : vector<128x128xf32>
    %23 = tpu.transpose %22, [1, 0] : vector<128x128xf32> -> vector<128x128xf32>
    %24 = arith.truncf %23 : vector<128x128xf32> to vector<128x128xbf16>
    %c0_15 = arith.constant 0 : index
    %c0_16 = arith.constant 0 : index
    %25 = vector.load %arg7[%c0_15, %c0_16] : memref<128x128xbf16, #tpu.memory_space<vmem>>, vector<128x128xbf16>
    tpu.vector_store %arg7[%c0_15, %c0_16], %24 {strides = array<i32>} : memref<128x128xbf16, #tpu.memory_space<vmem>>, vector<128x128xbf16>,
    return
  }
  func.func @transform_0(%arg0: i32) -> (i32, i32) {
    %c0_i32 = arith.constant 0 : i32
    %c0_i32_0 = arith.constant 0 : i32
    return %arg0, %c0_i32 : i32, i32
  }
  func.func @transform_1(%arg0: i32) -> (i32, i32) {
    %c0_i32 = arith.constant 0 : i32
    %c0_i32_0 = arith.constant 0 : i32
    %c0_i32_1 = arith.constant 0 : i32
    return %c0_i32, %c0_i32_0 : i32, i32
  }
  func.func @transform_2(%arg0: i32) -> (i32, i32) {
    %c0_i32 = arith.constant 0 : i32
    %c0_i32_0 = arith.constant 0 : i32
    %c0_i32_1 = arith.constant 0 : i32
    return %c0_i32, %c0_i32_0 : i32, i32
  }
  func.func @transform_3(%arg0: i32) -> (i32, i32) {
    %c0_i32 = arith.constant 0 : i32
    %c0_i32_0 = arith.constant 0 : i32
    %c0_i32_1 = arith.constant 0 : i32
    return %c0_i32, %c0_i32_0 : i32, i32
  }
  func.func @transform_4(%arg0: i32) -> (i32, i32) {
    %c0_i32 = arith.constant 0 : i32
    %c0_i32_0 = arith.constant 0 : i32
    %c0_i32_1 = arith.constant 0 : i32
    return %c0_i32, %c0_i32_0 : i32, i32
  }
  func.func @transform_5(%arg0: i32) -> (i32, i32) {
    %c0_i32 = arith.constant 0 : i32
    %c0_i32_0 = arith.constant 0 : i32
    return %arg0, %c0_i32 : i32, i32
  }
  func.func @transform_6(%arg0: i32) -> (i32, i32) {
    %c0_i32 = arith.constant 0 : i32
    %c0_i32_0 = arith.constant 0 : i32
    return %c0_i32, %arg0 : i32, i32
  }
}

</mosaic_0001>

<bundles_post_ra>
// kernel: tpu_custom_call.1
= control target key start
LH: loop header
LB: loop body
LE: loop exit
PB: predicated region body
PF: predicated region fallthrough
CT: control target
= control target key end

     0   :  { %12 = vsyncpa [#allocation3], 0  ;;  %s1375_s0 = inlined_call_operand.hbm [shape: bf16[128,128], index: 0, kind: input, shape index: {}]   ;;  %s1376_s1 = inlined_call_operand.hbm [shape: bf16[128,128], index: 1, kind: input, shape index: {}]   ;;  %s1377_s2 = inlined_call_operand.vmem [shape: f32[1,128], index: 2, kind: input, shape index: {}]   ;;  %s1378_s3 = inlined_call_operand.hbm [shape: bf16[128,128], index: 3, kind: input, shape index: {}]   ;;  %s1379_s4 = inlined_call_operand.vmem [shape: f32[1,128], index: 4, kind: input, shape index: {}]   ;;  %s1380_s5 = inlined_call_operand.hbm [shape: f32[128,128], index: 5, kind: output, shape index: {0}]   ;;  %s1381_s6 = inlined_call_operand.hbm [shape: bf16[128,128], index: 6, kind: output, shape index: {1}]  }
   0x1   :  { %13 = vsyncpa [#allocation6], 0 }
   0x2   :  { %14 = vsyncpa [#allocation4], 0 }
   0x3   :  { %15 = vsyncpa [#allocation10], 0  ;;  %s1132_s21 = smov [#allocation5]   ;;  %s1133_s23 = smov [#allocation2]  }
   0x4   :  { %s33_s22 = sshll.u32 %s1132_s21, 4  ;;  %s21_s24 = sshll.u32 %s1133_s23, 4  ;;  %s34_s22 = int_to_ptr.vmem [resolvable:$true] %s33_s22  ;;  %s1176_s24 = int_to_ptr.vmem [resolvable:$true] %s21_s24 }
   0x5   :  { %s1014_s27 = scalar_lea.hbm %s1376_s1, 1024 }
   0x6   :  { %p1015_p0 = scmp.ne.s32.totalorder %s1376_s1, %s1014_s27  ;;  %p1018_p1 = scmp.lt.u32.totalorder %s1014_s27, %s1376_s1 }
   0x8   :  { %p1020_p2 = pnand %p1018_p1, %p1015_p0 }
   0xa   :  { %1023 = shalt.err (!%p1020_p2)
}
   0xb   :  { %s1024_s8 = scalar_lea.vmem %s34_s22, 1024  ;;  %p1029_p4 = scmp.lt.s32.totalorder %s34_s22, %s34_s22 }
   0xc   :  { %p1025_p3 = scmp.ne.s32.totalorder %s34_s22, %s1024_s8  ;;  %p1030_p5 = scmp.lt.s32.totalorder %s1024_s8, %s1024_s8 }
   0xe   :  { %p1031_p6 = por %p1030_p5, %p1029_p4 }
  0x10   :  { %p1032_p7 = pnand %p1031_p6, %p1025_p3 }
  0x12   :  { %1035 = shalt.err (!%p1032_p7)
}
  0x13   :  { %s1134_s9 = smov 64   ;;  %s1135_s10 = smov 4  }
  0x14   :  { %39 = dma.hbm_to_vmem [thread:$0]  %s1376_s1, 1024, %s34_s22, [#allocation6], %s1134_s9, %s1134_s9, %s1135_s10  }
  0x15   :  { %s1036_s15 = scalar_lea.hbm %s1375_s0, 1024 }
  0x16   :  { %p1037_p8 = scmp.ne.s32.totalorder %s1375_s0, %s1036_s15  ;;  %p1040_p9 = scmp.lt.u32.totalorder %s1036_s15, %s1375_s0 }
  0x18   :  { %p1042_p10 = pnand %p1040_p9, %p1037_p8 }
  0x1a   :  { %1045 = shalt.err (!%p1042_p10)
}
  0x1b   :  { %s1046_s20 = scalar_lea.vmem %s1176_s24, 1024  ;;  %p1051_p12 = scmp.lt.s32.totalorder %s1176_s24, %s1176_s24 }
  0x1c   :  { %p1047_p11 = scmp.ne.s32.totalorder %s1176_s24, %s1046_s20  ;;  %p1052_p13 = scmp.lt.s32.totalorder %s1046_s20, %s1046_s20 }
  0x1e   :  { %p1053_p0 = por %p1052_p13, %p1051_p12 }
  0x20   :  { %p1054_p1 = pnand %p1053_p0, %p1047_p11 }
  0x22   :  { %1057 = shalt.err (!%p1054_p1)
}
  0x23   :  { %27 = dma.hbm_to_vmem [thread:$0]  %s1375_s0, 1024, %s1176_s24, [#allocation3], %s1134_s9, %s1134_s9, %s1135_s10  }
  0x24   :  { %s1136_s22 = smov [#allocation7]   ;;  %s1058_s27 = scalar_lea.hbm %s1378_s3, 1024 }
  0x25   :  { %s47_s23 = sshll.u32 %s1136_s22, 4  ;;  %p1059_p2 = scmp.ne.s32.totalorder %s1378_s3, %s1058_s27  ;;  %s48_s23 = int_to_ptr.vmem [resolvable:$true] %s47_s23 }
  0x26   :  { %p1062_p3 = scmp.lt.u32.totalorder %s1058_s27, %s1378_s3 }
  0x28   :  { %p1064_p4 = pnand %p1062_p3, %p1059_p2 }
  0x2a   :  { %1067 = shalt.err (!%p1064_p4)
}
  0x2b   :  { %s1068_s8 = scalar_lea.vmem %s48_s23, 1024  ;;  %p1073_p6 = scmp.lt.s32.totalorder %s48_s23, %s48_s23 }
  0x2c   :  { %p1069_p5 = scmp.ne.s32.totalorder %s48_s23, %s1068_s8  ;;  %p1074_p7 = scmp.lt.s32.totalorder %s1068_s8, %s1068_s8 }
  0x2e   :  { %p1075_p8 = por %p1074_p7, %p1073_p6 }
  0x30   :  { %p1076_p9 = pnand %p1075_p8, %p1069_p5 }
  0x32   :  { %1079 = shalt.err (!%p1076_p9)
}
  0x33   :  { %53 = dma.hbm_to_vmem [thread:$0]  %s1378_s3, 1024, %s48_s23, [#allocation6], %s1134_s9, %s1134_s9, %s1135_s10  }
  0x34   :  { %1124 = dma.done.wait [#allocation3], 1024  }
  0x35   :  { %1125 = vsyncadd [#allocation3], 4294966272 }
  0x36   :  { %1126 = dma.done.wait [#allocation6], 2048  }
  0x37   :  { %1127 = vsyncadd [#allocation6], 4294965248  ;;  %v958_v0 = vld [vmem:[#allocation5] sm:$0xff]   ;;  %v959_v1 = vld [vmem:[#allocation5 + $0x8] sm:$0xff]  }
  0x38   :  { %885 = vmatprep.subr.bf16.mxu0 %v958_v0  ;;  %v960_v2 = vld [vmem:[#allocation5 + $0x10] sm:$0xff]   ;;  %v961_v3 = vld [vmem:[#allocation5 + $0x18] sm:$0xff]   ;;  %v966_v4 = vld [vmem:[#allocation2] sm:$0xff]  }
  0x39   :  { %886 = vmatpush3.bf16.msra.mxu0 %v958_v0  ;;  %901 = vmatprep.mubr.bf16.mxu0 %v966_v4  ;;  %v962_v5 = vld [vmem:[#allocation5 + $0x20] sm:$0xff]   ;;  %v963_v6 = vld [vmem:[#allocation5 + $0x28] sm:$0xff]   ;;  %v964_v9 = vld [vmem:[#allocation5 + $0x30] sm:$0xff]  }
  0x3a   :  { %887 = vmatprep.subr.bf16.mxu0 %v959_v1  ;;  %v974_v7 = vld [vmem:[#allocation7] sm:$0xff]   ;;  %v975_v8 = vld [vmem:[#allocation7 + $0x8] sm:$0xff]   ;;  %v976_v10 = vld [vmem:[#allocation7 + $0x10] sm:$0xff]  }
  0x3b   :  { %917 = vmatprep.subr.bf16.mxu1 %v974_v7  ;;  %v965_v11 = vld [vmem:[#allocation5 + $0x38] sm:$0xff]   ;;  %v978_v13 = vld [vmem:[#allocation7 + $0x20] sm:$0xff]   ;;  %v967_v14 = vld [vmem:[#allocation2 + $0x8] sm:$0xff]  }
  0x3c   :  { %918 = vmatpush3.bf16.msra.mxu1 %v974_v7  ;;  %v977_v12 = vld [vmem:[#allocation7 + $0x18] sm:$0xff]   ;;  %v968_v15 = vld [vmem:[#allocation2 + $0x10] sm:$0xff]   ;;  %v979_v16 = vld [vmem:[#allocation7 + $0x28] sm:$0xff]  }
  0x3d   :  { %888 = vmatpush3.bf16.msra.mxu0 %v959_v1  ;;  %919 = vmatprep.subr.bf16.mxu1 %v975_v8  ;;  %v969_v17 = vld [vmem:[#allocation2 + $0x18] sm:$0xff]   ;;  %v970_v18 = vld [vmem:[#allocation2 + $0x20] sm:$0xff]   ;;  %v971_v19 = vld [vmem:[#allocation2 + $0x28] sm:$0xff]  }
  0x3e   :  { %889 = vmatprep.subr.bf16.mxu0 %v960_v2  ;;  %v972_v20 = vld [vmem:[#allocation2 + $0x30] sm:$0xff]   ;;  %v973_v21 = vld [vmem:[#allocation2 + $0x38] sm:$0xff]   ;;  %v748_v24 = vld [vmem:[%s1377_s2] ss:$0 sm:$0xff] }
  0x3f   :  { %v980_v22 = vld [vmem:[#allocation7 + $0x30] sm:$0xff]   ;;  %v981_v23 = vld [vmem:[#allocation7 + $0x38] sm:$0xff]  }
  0x40   :  { %920 = vmatpush3.bf16.msra.mxu1 %v975_v8 }
  0x41   :  { %890 = vmatpush3.bf16.msra.mxu0 %v960_v2  ;;  %921 = vmatprep.subr.bf16.mxu1 %v976_v10 }
  0x42   :  { %891 = vmatprep.subr.bf16.mxu0 %v961_v3 }
  0x44   :  { %922 = vmatpush3.bf16.msra.mxu1 %v976_v10 }
  0x45   :  { %892 = vmatpush3.bf16.msra.mxu0 %v961_v3  ;;  %923 = vmatprep.subr.bf16.mxu1 %v977_v12 }
  0x46   :  { %893 = vmatprep.subr.bf16.mxu0 %v962_v5 }
  0x48   :  { %924 = vmatpush3.bf16.msra.mxu1 %v977_v12 }
  0x49   :  { %894 = vmatpush3.bf16.msra.mxu0 %v962_v5  ;;  %925 = vmatprep.subr.bf16.mxu1 %v978_v13 }
  0x4a   :  { %895 = vmatprep.subr.bf16.mxu0 %v963_v6 }
  0x4c   :  { %926 = vmatpush3.bf16.msra.mxu1 %v978_v13 }
  0x4d   :  { %896 = vmatpush3.bf16.msra.mxu0 %v963_v6  ;;  %927 = vmatprep.subr.bf16.mxu1 %v979_v16 }
  0x4e   :  { %897 = vmatprep.subr.bf16.mxu0 %v964_v9 }
  0x50   :  { %928 = vmatpush3.bf16.msra.mxu1 %v979_v16 }
  0x51   :  { %898 = vmatpush3.bf16.msra.mxu0 %v964_v9  ;;  %929 = vmatprep.subr.bf16.mxu1 %v980_v22 }
  0x52   :  { %899 = vmatprep.subr.bf16.mxu0 %v965_v11 }
  0x54   :  { %930 = vmatpush3.bf16.msra.mxu1 %v980_v22 }
  0x55   :  { %900 = vmatpush3.bf16.msra.mxu0 %v965_v11  ;;  %931 = vmatprep.subr.bf16.mxu1 %v981_v23 }
  0x58   :  { %902 = vmatmul.mubr.bf16.vlgmr.msra.gmra.mrb[0].mxu0 %v967_v14  ;;  %932 = vmatpush3.bf16.msra.mxu1 %v981_v23 }
  0x59   :  { %905 = vmatprep.mubr.bf16.mxu0 %v968_v15 }
  0x60   :  { %906 = vmatmul.mubr.bf16.gmra.mrb[4].mxu0 %v969_v17  ;;  %v1234_v17 = vld [vmem:[%s1379_s4] ss:$0 sm:$0xff]  ;;  %s1137_s4 = smov [#allocation8]  }
  0x61   :  { %909 = vmatprep.mubr.bf16.mxu0 %v970_v18  ;;  %s719_s13 = sshll.u32 %s1137_s4, 4  ;;  %s720_s13 = int_to_ptr.vmem [resolvable:$true] %s719_s13 }
  0x62   :  { %s1080_s14 = scalar_lea.vmem %s720_s13, 2048  ;;  %p1085_p11 = scmp.lt.s32.totalorder %s720_s13, %s720_s13 }
  0x63   :  { %p1081_p10 = scmp.ne.s32.totalorder %s720_s13, %s1080_s14  ;;  %p1086_p12 = scmp.lt.s32.totalorder %s1080_s14, %s1080_s14 }
  0x65   :  { %p1087_p13 = por %p1086_p12, %p1085_p11 }
  0x67   :  { %p1088_p0 = pnand %p1087_p13, %p1081_p10 }
  0x68   :  { %910 = vmatmul.mubr.bf16.gmra.mrb[8].mxu0 %v971_v19 }
  0x69   :  { %913 = vmatprep.mubr.bf16.mxu0 %v972_v20 }
  0x70   :  { %914 = vmatmul.mubr.bf16.gmra.mrb[12].mxu0 %v973_v21 }
 0x12b   :  { %v903_v25 = vpop.f32.mrb[0].mxu0 }
 0x12c   :  { %v244_v26 = vadd.f32 %v903_v25, %v748_v24  ;;  %v235_v27 = vpop.f32.mrb[1].mxu0 }
 0x12d   :  { %v236_v28 = vadd.f32 %v748_v24, %v235_v27  ;;  %v904_v29 = vpop.f32.mrb[2].mxu0 }
 0x12e   :  { %v247_v30 = vadd.f32 %v904_v29, %v748_v24  ;;  %v238_v31 = vpop.f32.mrb[3].mxu0  ;;  %v300_v33 = vmax.f32 %v244_v26, 0.0 }
 0x12f   :  { %v239_v32 = vadd.f32 %v748_v24, %v238_v31  ;;  %v298_v35 = vmax.f32 %v236_v28, 0.0 }
 0x130   :  { %v301_v34 = vmax.f32 %v247_v30, 0.0 }
 0x131   :  { %v299_v36 = vmax.f32 %v239_v32, 0.0 }
 0x132   :  { %v315_v37 = vpack.c.bf16 %v301_v34, %v300_v33 }
 0x133   :  { %v907_v38 = vpop.f32.mrb[4].mxu0  ;;  %v314_v39 = vpack.c.bf16 %v299_v36, %v298_v35 }
 0x134   :  { %v260_v40 = vadd.f32 %v907_v38, %v748_v24  ;;  %v251_v41 = vpop.f32.mrb[5].mxu0 }
 0x135   :  { %v252_v42 = vadd.f32 %v748_v24, %v251_v41  ;;  %v908_v43 = vpop.f32.mrb[6].mxu0  ;;  %933 = vmatprep.mubr.bf16.mxu1 %v314_v39 }
 0x136   :  { %v304_v44 = vmax.f32 %v260_v40, 0.0  ;;  %v263_v45 = vadd.f32 %v908_v43, %v748_v24  ;;  %v254_v46 = vpop.f32.mrb[7].mxu0  ;;  %934 = vmatmul.mubr.bf16.vlgmr.msra.gmra.mrb[0].mxu1 %v315_v37 }
 0x137   :  { %v302_v47 = vmax.f32 %v252_v42, 0.0  ;;  %v255_v48 = vadd.f32 %v748_v24, %v254_v46 }
 0x138   :  { %v305_v49 = vmax.f32 %v263_v45, 0.0 }
 0x139   :  { %v303_v50 = vmax.f32 %v255_v48, 0.0 }
 0x13a   :  { %v317_v51 = vpack.c.bf16 %v305_v49, %v304_v44 }
 0x13b   :  { %v316_v52 = vpack.c.bf16 %v303_v50, %v302_v47  ;;  %v911_v53 = vpop.f32.mrb[8].mxu0 }
 0x13c   :  { %v276_v54 = vadd.f32 %v911_v53, %v748_v24  ;;  %v267_v55 = vpop.f32.mrb[9].mxu0 }
 0x13d   :  { %v268_v56 = vadd.f32 %v748_v24, %v267_v55  ;;  %v912_v57 = vpop.f32.mrb[10].mxu0  ;;  %937 = vmatprep.mubr.bf16.mxu1 %v316_v52 }
 0x13e   :  { %v308_v58 = vmax.f32 %v276_v54, 0.0  ;;  %v279_v59 = vadd.f32 %v912_v57, %v748_v24  ;;  %v270_v60 = vpop.f32.mrb[11].mxu0  ;;  %938 = vmatmul.mubr.bf16.gmra.mrb[4].mxu1 %v317_v51 }
 0x13f   :  { %v306_v61 = vmax.f32 %v268_v56, 0.0  ;;  %v271_v62 = vadd.f32 %v748_v24, %v270_v60 }
 0x140   :  { %v309_v63 = vmax.f32 %v279_v59, 0.0 }
 0x141   :  { %v307_v0 = vmax.f32 %v271_v62, 0.0 }
 0x142   :  { %v319_v1 = vpack.c.bf16 %v309_v63, %v308_v58 }
 0x143   :  { %v318_v2 = vpack.c.bf16 %v307_v0, %v306_v61  ;;  %v915_v3 = vpop.f32.mrb[12].mxu0 }
 0x144   :  { %v292_v4 = vadd.f32 %v915_v3, %v748_v24  ;;  %v283_v5 = vpop.f32.mrb[13].mxu0 }
 0x145   :  { %v284_v6 = vadd.f32 %v748_v24, %v283_v5  ;;  %v916_v7 = vpop.f32.mrb[14].mxu0  ;;  %941 = vmatprep.mubr.bf16.mxu1 %v318_v2 }
 0x146   :  { %v312_v8 = vmax.f32 %v292_v4, 0.0  ;;  %v295_v9 = vadd.f32 %v916_v7, %v748_v24  ;;  %v286_v10 = vpop.f32.mrb[15].mxu0  ;;  %942 = vmatmul.mubr.bf16.gmra.mrb[8].mxu1 %v319_v1 }
 0x147   :  { %v310_v11 = vmax.f32 %v284_v6, 0.0  ;;  %v287_v12 = vadd.f32 %v748_v24, %v286_v10 }
 0x148   :  { %v313_v13 = vmax.f32 %v295_v9, 0.0 }
 0x149   :  { %v311_v14 = vmax.f32 %v287_v12, 0.0 }
 0x14a   :  { %v321_v15 = vpack.c.bf16 %v313_v13, %v312_v8 }
 0x14b   :  { %v320_v16 = vpack.c.bf16 %v311_v14, %v310_v11 }
 0x14d   :  { %945 = vmatprep.mubr.bf16.mxu1 %v320_v16 }
 0x14e   :  { %946 = vmatmul.mubr.bf16.gmra.mrb[12].mxu1 %v321_v15 }
 0x209   :  { %v935_v18 = vpop.f32.mrb[0].mxu1 }
 0x20a   :  { %v1237_v19 = vadd.f32 %v935_v18, %v1234_v17  ;;  %v427_v20 = vpop.f32.mrb[1].mxu1 }
 0x20b   :  { %v1240_v21 = vadd.f32 %v1234_v17, %v427_v20  ;;  %v936_v22 = vpop.f32.mrb[2].mxu1 }
 0x20c   :  { %492 = vst [vmem:[#allocation8 + $0x10] sm:$0xff] %v1237_v19  ;;  %v1244_v23 = vadd.f32 %v936_v22, %v1234_v17  ;;  %v430_v24 = vpop.f32.mrb[3].mxu1  ;;  %v508_v25 = vmul.f32 %v1237_v19, %v1237_v19 }
 0x20d   :  { %490 = vst [vmem:[#allocation8] sm:$0xff] %v1240_v21  ;;  %v1250_v26 = vadd.f32 %v1234_v17, %v430_v24  ;;  %v506_v27 = vmul.f32 %v1240_v21, %v1240_v21 }
 0x20e   :  { %493 = vst [vmem:[#allocation8 + $0x18] sm:$0xff] %v1244_v23  ;;  %526 = vadd.xlane.f32.xlu1 %v508_v25  ;;  %v509_v28 = vmul.f32 %v1244_v23, %v1244_v23 }
 0x20f   :  { %491 = vst [vmem:[#allocation8 + $0x8] sm:$0xff] %v1250_v26  ;;  %522 = vadd.xlane.f32.xlu0 %v506_v27  ;;  %v507_v30 = vmul.f32 %v1250_v26, %v1250_v26 }
 0x211   :  { %v939_v29 = vpop.f32.mrb[4].mxu1 }
 0x212   :  { %v1261_v31 = vadd.f32 %v939_v29, %v1234_v17  ;;  %528 = vadd.xlane.f32.xlu1 %v509_v28  ;;  %v443_v32 = vpop.f32.mrb[5].mxu1 }
 0x213   :  { %v1264_v33 = vadd.f32 %v1234_v17, %v443_v32  ;;  %v940_v34 = vpop.f32.mrb[6].mxu1  ;;  %524 = vadd.xlane.f32.xlu0 %v507_v30 }
 0x214   :  { %496 = vst [vmem:[#allocation8 + $0x30] sm:$0xff] %v1261_v31  ;;  %v1268_v35 = vadd.f32 %v940_v34, %v1234_v17  ;;  %v446_v36 = vpop.f32.mrb[7].mxu1  ;;  %v512_v37 = vmul.f32 %v1261_v31, %v1261_v31 }
 0x215   :  { %494 = vst [vmem:[#allocation8 + $0x20] sm:$0xff] %v1264_v33  ;;  %v1274_v38 = vadd.f32 %v1234_v17, %v446_v36  ;;  %v510_v41 = vmul.f32 %v1264_v33, %v1264_v33 }
 0x216   :  { %497 = vst [vmem:[#allocation8 + $0x38] sm:$0xff] %v1268_v35  ;;  %v513_v46 = vmul.f32 %v1268_v35, %v1268_v35 }
 0x217   :  { %495 = vst [vmem:[#allocation8 + $0x28] sm:$0xff] %v1274_v38  ;;  %534 = vadd.xlane.f32.xlu0 %v512_v37  ;;  %v511_v39 = vmul.f32 %v1274_v38, %v1274_v38 }
 0x219   :  { %v943_v40 = vpop.f32.mrb[8].mxu1  ;;  %532 = vadd.xlane.f32.xlu1 %v511_v39 }
 0x21a   :  { %v1283_v42 = vadd.f32 %v943_v40, %v1234_v17  ;;  %v459_v43 = vpop.f32.mrb[9].mxu1 }
 0x21b   :  { %v1286_v44 = vadd.f32 %v1234_v17, %v459_v43  ;;  %v944_v45 = vpop.f32.mrb[10].mxu1  ;;  %530 = vadd.xlane.f32.xlu0 %v510_v41 }
 0x21c   :  { %500 = vst [vmem:[#allocation8 + $0x50] sm:$0xff] %v1283_v42  ;;  %v1292_v47 = vadd.f32 %v944_v45, %v1234_v17  ;;  %v462_v48 = vpop.f32.mrb[11].mxu1  ;;  %v516_v49 = vmul.f32 %v1283_v42, %v1283_v42 }
 0x21d   :  { %498 = vst [vmem:[#allocation8 + $0x40] sm:$0xff] %v1286_v44  ;;  %v1298_v50 = vadd.f32 %v1234_v17, %v462_v48  ;;  %536 = vadd.xlane.f32.xlu1 %v513_v46  ;;  %v514_v52 = vmul.f32 %v1286_v44, %v1286_v44 }
 0x21e   :  { %501 = vst [vmem:[#allocation8 + $0x58] sm:$0xff] %v1292_v47  ;;  %v517_v54 = vmul.f32 %v1292_v47, %v1292_v47 }
 0x21f   :  { %499 = vst [vmem:[#allocation8 + $0x48] sm:$0xff] %v1298_v50  ;;  %542 = vadd.xlane.f32.xlu0 %v516_v49  ;;  %v515_v51 = vmul.f32 %v1298_v50, %v1298_v50 }
 0x221   :  { %v947_v53 = vpop.f32.mrb[12].mxu1  ;;  %540 = vadd.xlane.f32.xlu1 %v515_v51 }
 0x222   :  { %v1309_v55 = vadd.f32 %v947_v53, %v1234_v17  ;;  %v475_v56 = vpop.f32.mrb[13].mxu1 }
 0x223   :  { %v1312_v57 = vadd.f32 %v1234_v17, %v475_v56  ;;  %v948_v58 = vpop.f32.mrb[14].mxu1  ;;  %538 = vadd.xlane.f32.xlu0 %v514_v52 }
 0x224   :  { %504 = vst [vmem:[#allocation8 + $0x70] sm:$0xff] %v1309_v55  ;;  %v1316_v59 = vadd.f32 %v948_v58, %v1234_v17  ;;  %v478_v60 = vpop.f32.mrb[15].mxu1  ;;  %v520_v61 = vmul.f32 %v1309_v55, %v1309_v55 }
 0x225   :  { %502 = vst [vmem:[#allocation8 + $0x60] sm:$0xff] %v1312_v57  ;;  %v1322_v62 = vadd.f32 %v1234_v17, %v478_v60  ;;  %544 = vadd.xlane.f32.xlu1 %v517_v54  ;;  %v518_v0 = vmul.f32 %v1312_v57, %v1312_v57 }
 0x226   :  { %505 = vst [vmem:[#allocation8 + $0x78] sm:$0xff] %v1316_v59  ;;  %v521_v1 = vmul.f32 %v1316_v59, %v1316_v59 }
 0x227   :  { %503 = vst [vmem:[#allocation8 + $0x68] sm:$0xff] %v1322_v62  ;;  %550 = vadd.xlane.f32.xlu0 %v520_v61  ;;  %v519_v63 = vmul.f32 %v1322_v62, %v1322_v62 }
 0x229   :  { %548 = vadd.xlane.f32.xlu1 %v519_v63 }
 0x22b   :  { %546 = vadd.xlane.f32.xlu0 %v518_v0 }
 0x22d   :  { %552 = vadd.xlane.f32.xlu1 %v521_v1 }
 0x29b   :  { %v527_v2 = vpop.xlane.xlu1 %526 }
 0x29c   :  { %v523_v3 = vpop.xlane.xlu0 %522  ;;  %v556_v6 = vmax.f32 %v527_v2, 1e-24 }
 0x29d   :  { %v554_v4 = vmax.f32 %v523_v3, 1e-24 }
 0x29f   :  { %982 = vrsqrt.f32 %v554_v4  ;;  %v529_v8 = vpop.xlane.xlu1 %528 }
 0x2a0   :  { %v525_v5 = vpop.xlane.xlu0 %524  ;;  %v557_v10 = vmax.f32 %v529_v8, 1e-24 }
 0x2a1   :  { %v555_v7 = vmax.f32 %v525_v5, 1e-24 }
 0x2a3   :  { %984 = vrsqrt.f32 %v555_v7 }
 0x2a4   :  { %v535_v9 = vpop.xlane.xlu0 %534  ;;  %986 = vrsqrt.f32 %v556_v6 }
 0x2a5   :  { %988 = vrsqrt.f32 %v557_v10  ;;  %v560_v24 = vmax.f32 %v535_v9, 1e-24 }
 0x2a6   :  { %v533_v14 = vpop.xlane.xlu1 %532 }
 0x2a7   :  { %v559_v17 = vmax.f32 %v533_v14, 1e-24 }
 0x2a8   :  { %v531_v11 = vpop.xlane.xlu0 %530 }
 0x2a9   :  { %v983_v12 = vpop.eup %982  ;;  %v558_v13 = vmax.f32 %v531_v11, 1e-24 }
 0x2aa   :  { %v586_v15 = vmul.f32 %v983_v12, %v1240_v21  ;;  %v537_v25 = vpop.xlane.xlu1 %536 }
 0x2ab   :  { %990 = vrsqrt.f32 %v558_v13  ;;  %v561_v29 = vmax.f32 %v537_v25, 1e-24 }
 0x2ac   :  { %602 = vxpose.xlu0.b32.start [1/16] %v586_v15, 128  ;;  %v543_v22 = vpop.xlane.xlu0 %542  ;;  %992 = vrsqrt.f32 %v559_v17 }
 0x2ad   :  { %v985_v16 = vpop.eup %984  ;;  %994 = vrsqrt.f32 %v560_v24  ;;  %v564_v43 = vmax.f32 %v543_v22, 1e-24 }
 0x2ae   :  { %v587_v18 = vmul.f32 %v985_v16, %v1250_v26  ;;  %v987_v20 = vpop.eup %986  ;;  %996 = vrsqrt.f32 %v561_v29  ;;  %v541_v26 = vpop.xlane.xlu1 %540 }
 0x2af   :  { %v588_v27 = vmul.f32 %v987_v20, %v1237_v19  ;;  %v989_v28 = vpop.eup %988  ;;  %v563_v39 = vmax.f32 %v541_v26, 1e-24 }
 0x2b0   :  { %603 = vxpose.xlu0.b32.cont [2/16] %v587_v18, 128  ;;  %v539_v30 = vpop.xlane.xlu0 %538  ;;  %v589_v21 = vmul.f32 %v989_v28, %v1244_v23 }
 0x2b1   :  { %v562_v34 = vmax.f32 %v539_v30, 1e-24 }
 0x2b2   :  { %v545_v45 = vpop.xlane.xlu1 %544 }
 0x2b3   :  { %998 = vrsqrt.f32 %v562_v34  ;;  %v565_v48 = vmax.f32 %v545_v45, 1e-24 }
 0x2b4   :  { %604 = vxpose.xlu0.b32.cont [3/16] %v588_v27, 128  ;;  %v551_v41 = vpop.xlane.xlu0 %550  ;;  %1000 = vrsqrt.f32 %v563_v39 }
 0x2b5   :  { %v991_v32 = vpop.eup %990  ;;  %1002 = vrsqrt.f32 %v564_v43  ;;  %v568_v60 = vmax.f32 %v551_v41, 1e-24 }
 0x2b6   :  { %v590_v36 = vmul.f32 %v991_v32, %v1264_v33  ;;  %v993_v37 = vpop.eup %992  ;;  %1004 = vrsqrt.f32 %v565_v48 }
 0x2b7   :  { %v591_v19 = vmul.f32 %v993_v37, %v1274_v38  ;;  %v995_v40 = vpop.eup %994  ;;  %v549_v38 = vpop.xlane.xlu1 %548 }
 0x2b8   :  { %605 = vxpose.xlu0.b32.cont [4/16] %v589_v21, 128  ;;  %v592_v23 = vmul.f32 %v995_v40, %v1261_v31  ;;  %v997_v46 = vpop.eup %996  ;;  %v547_v49 = vpop.xlane.xlu0 %546  ;;  %v567_v56 = vmax.f32 %v549_v38, 1e-24 }
 0x2b9   :  { %v593_v33 = vmul.f32 %v997_v46, %v1268_v35  ;;  %v566_v52 = vmax.f32 %v547_v49, 1e-24 }
 0x2bb   :  { %1006 = vrsqrt.f32 %v566_v52  ;;  %v553_v61 = vpop.xlane.xlu1 %552 }
 0x2bc   :  { %606 = vxpose.xlu0.b32.cont [5/16] %v590_v36, 128  ;;  %1008 = vrsqrt.f32 %v567_v56  ;;  %v569_v0 = vmax.f32 %v553_v61, 1e-24 }
 0x2bd   :  { %v999_v51 = vpop.eup %998  ;;  %1010 = vrsqrt.f32 %v568_v60 }
 0x2be   :  { %v594_v53 = vmul.f32 %v999_v51, %v1286_v44  ;;  %v1001_v54 = vpop.eup %1000  ;;  %1012 = vrsqrt.f32 %v569_v0 }
 0x2bf   :  { %v595_v31 = vmul.f32 %v1001_v54, %v1298_v50  ;;  %v1003_v58 = vpop.eup %1002 }
 0x2c0   :  { %607 = vxpose.xlu0.b32.cont [6/16] %v591_v19, 128  ;;  %v596_v35 = vmul.f32 %v1003_v58, %v1283_v42  ;;  %v1005_v63 = vpop.eup %1004 }
 0x2c1   :  { %v597_v1 = vmul.f32 %v1005_v63, %v1292_v47 }
 0x2c4   :  { %608 = vxpose.xlu0.b32.cont [7/16] %v592_v23, 128 }
 0x2c5   :  { %v1007_v44 = vpop.eup %1006 }
 0x2c6   :  { %v598_v2 = vmul.f32 %v1007_v44, %v1312_v57  ;;  %v1009_v3 = vpop.eup %1008 }
 0x2c7   :  { %v599_v50 = vmul.f32 %v1009_v3, %v1322_v62  ;;  %v1011_v4 = vpop.eup %1010 }
 0x2c8   :  { %609 = vxpose.xlu0.b32.cont [8/16] %v593_v33, 128  ;;  %v600_v5 = vmul.f32 %v1011_v4, %v1309_v55  ;;  %v1013_v42 = vpop.eup %1012 }
 0x2c9   :  { %v601_v6 = vmul.f32 %v1013_v42, %v1316_v59 }
 0x2cc   :  { %610 = vxpose.xlu0.b32.cont [9/16] %v594_v53, 128 }
 0x2d0   :  { %611 = vxpose.xlu0.b32.cont [10/16] %v595_v31, 128 }
 0x2d4   :  { %612 = vxpose.xlu0.b32.cont [11/16] %v596_v35, 128 }
 0x2d8   :  { %613 = vxpose.xlu0.b32.cont [12/16] %v597_v1, 128 }
 0x2dc   :  { %614 = vxpose.xlu0.b32.cont [13/16] %v598_v2, 128 }
 0x2e0   :  { %615 = vxpose.xlu0.b32.cont [14/16] %v599_v50, 128 }
 0x2e4   :  { %616 = vxpose.xlu0.b32.cont [15/16] %v600_v5, 128 }
 0x2e8   :  { %617 = vxpose.xlu0.b32.end [16/16] %v601_v6, 128 }
 0x2e9   :  { %1091 = shalt.err (!%p1088_p0)
}
 0x2ea   :  { %s1092_s17 = scalar_lea.hbm %s1380_s5, 2048 }
 0x2eb   :  { %p1093_p1 = scmp.ne.s32.totalorder %s1380_s5, %s1092_s17  ;;  %p1096_p2 = scmp.lt.u32.totalorder %s1092_s17, %s1380_s5 }
 0x2ed   :  { %p1098_p3 = pnand %p1096_p2, %p1093_p1 }
 0x2ef   :  { %1101 = shalt.err (!%p1098_p3)
}
 0x2f0   :  { %s1138_s21 = smov 128   ;;  %s1139_s22 = smov 8  }
 0x2f1   :  { %725 = dma.vmem_to_hbm [thread:$0]  %s720_s13, 2048, %s1380_s5, [#allocation4], %s1138_s21, %s1138_s21, %s1139_s22  }
 0x2f2   :  { %s1140_s5 = smov [#allocation9]  }
 0x2f3   :  { %s731_s26 = sshll.u32 %s1140_s5, 4  ;;  %s732_s26 = int_to_ptr.vmem [resolvable:$true] %s731_s26 }
 0x2f4   :  { %s1102_s27 = scalar_lea.vmem %s732_s26, 1024  ;;  %p1107_p5 = scmp.lt.s32.totalorder %s732_s26, %s732_s26 }
 0x2f5   :  { %p1103_p4 = scmp.ne.s32.totalorder %s732_s26, %s1102_s27  ;;  %p1108_p6 = scmp.lt.s32.totalorder %s1102_s27, %s1102_s27 }
 0x2f7   :  { %p1109_p7 = por %p1108_p6, %p1107_p5 }
 0x2f9   :  { %p1110_p8 = pnand %p1109_p7, %p1103_p4 }
 0x32c   :  { %v618_v47 = vpop.trf.xlu0 }
 0x330   :  { %v619_v55 = vpop.trf.xlu0 }
 0x331   :  { %v809_v57 = vpack.c.bf16 %v619_v55, %v618_v47 }
 0x333   :  { %810 = vst [vmem:[#allocation9] sm:$0xff] %v809_v57  }
 0x334   :  { %v620_v59 = vpop.trf.xlu0 }
 0x338   :  { %v621_v62 = vpop.trf.xlu0 }
 0x339   :  { %v814_v7 = vpack.c.bf16 %v621_v62, %v620_v59 }
 0x33b   :  { %846 = vst [vmem:[#allocation9 + $0x8] sm:$0xff] %v814_v7  }
 0x33c   :  { %v622_v8 = vpop.trf.xlu0 }
 0x340   :  { %v623_v9 = vpop.trf.xlu0 }
 0x341   :  { %v819_v10 = vpack.c.bf16 %v623_v9, %v622_v8 }
 0x343   :  { %847 = vst [vmem:[#allocation9 + $0x10] sm:$0xff] %v819_v10  }
 0x344   :  { %v624_v11 = vpop.trf.xlu0 }
 0x348   :  { %v625_v12 = vpop.trf.xlu0 }
 0x349   :  { %v824_v13 = vpack.c.bf16 %v625_v12, %v624_v11 }
 0x34b   :  { %848 = vst [vmem:[#allocation9 + $0x18] sm:$0xff] %v824_v13  }
 0x34c   :  { %v626_v14 = vpop.trf.xlu0 }
 0x350   :  { %v627_v15 = vpop.trf.xlu0 }
 0x351   :  { %v829_v16 = vpack.c.bf16 %v627_v15, %v626_v14 }
 0x353   :  { %849 = vst [vmem:[#allocation9 + $0x20] sm:$0xff] %v829_v16  }
 0x354   :  { %v628_v17 = vpop.trf.xlu0 }
 0x358   :  { %v629_v18 = vpop.trf.xlu0 }
 0x359   :  { %v834_v20 = vpack.c.bf16 %v629_v18, %v628_v17 }
 0x35b   :  { %850 = vst [vmem:[#allocation9 + $0x28] sm:$0xff] %v834_v20  }
 0x35c   :  { %v630_v22 = vpop.trf.xlu0 }
 0x360   :  { %v631_v24 = vpop.trf.xlu0 }
 0x361   :  { %v839_v25 = vpack.c.bf16 %v631_v24, %v630_v22 }
 0x363   :  { %851 = vst [vmem:[#allocation9 + $0x30] sm:$0xff] %v839_v25  }
 0x364   :  { %v632_v27 = vpop.trf.xlu0 }
 0x368   :  { %v633_v28 = vpop.trf.xlu0 }
 0x369   :  { %v844_v29 = vpack.c.bf16 %v633_v28, %v632_v27 }
 0x36b   :  { %852 = vst [vmem:[#allocation9 + $0x38] sm:$0xff] %v844_v29  }
 0x36c   :  { %1113 = shalt.err (!%p1110_p8)
}
 0x36d   :  { %s1114_s30 = scalar_lea.hbm %s1381_s6, 1024 }
 0x36e   :  { %p1115_p9 = scmp.ne.s32.totalorder %s1381_s6, %s1114_s30  ;;  %p1118_p10 = scmp.lt.u32.totalorder %s1114_s30, %s1381_s6 }
 0x370   :  { %p1120_p11 = pnand %p1118_p10, %p1115_p9 }
 0x372   :  { %1123 = shalt.err (!%p1120_p11)
}
 0x373   :  { %737 = dma.vmem_to_hbm [thread:$0]  %s732_s26, 1024, %s1381_s6, [#allocation10], %s1134_s9, %s1134_s9, %s1135_s10  }
 0x374   :  { %1128 = dma.done.wait [#allocation4], 2048  }
 0x375   :  { %1129 = vsyncadd [#allocation4], 4294965248 }
 0x376   :  { %1130 = dma.done.wait [#allocation10], 1024  }
 0x377   :  { %1131 = vsyncadd [#allocation10], 4294966272 }
 0x378   :  { %744 = vsyncpa [#allocation3], 1 }
 0x379   :  { %745 = vsyncpa [#allocation6], 1 }
 0x37a   :  { %746 = vsyncpa [#allocation4], 1 }
 0x37b   :  { %747 = vsyncpa [#allocation10], 1 }

</bundles_post_ra>
